<compile_context>
chip_gen: v7x
topology: tpu7x:2x2x1
jax: 0.10.0
libtpu: 0.0.40
codegen_flags: <defaults>
</compile_context>

<pallas_src>
import functools
import math

import jax
import jax.numpy as jnp
from jax.experimental import pallas as pl
from jax.experimental.pallas import tpu as pltpu


# ----------------------------------------------------------------------------
# Kernel 1: fused projection  proj = x @ W_big  (bf16 MXU operands, f32 accumulate)
#   outputs: xp (bf16, value/source side), al^T (f32, source logits), ar (f32, dest logits)
# ----------------------------------------------------------------------------
def gat_proj_kernel(x_ref, wbig_ref, xp_ref, alt_ref, ar_ref, *, d, heads):
    proj = jnp.dot(x_ref[...], wbig_ref[...], preferred_element_type=jnp.float32)  # [TM, D+2H]
    xp_ref[...] = proj[:, :d].astype(jnp.bfloat16)            # [TM, D]  bf16 MXU operand later
    alt_ref[...] = proj[:, d:d + heads].T                      # [H, TM]  one hoisted XLU transpose
    ar_ref[...] = proj[:, d + heads:d + 2 * heads]             # [TM, H]


# ----------------------------------------------------------------------------
# Kernel 2: per-row-tile dense masked multi-head attention + bias + ELU
# ----------------------------------------------------------------------------
def gat_attn_kernel(xp_ref, alt_ref, ar_ref, maskb_ref, bias_ref, out_ref, yacc_ref,
                    *, heads, head_dim, neg_slope):
    mask_b = maskb_ref[...].astype(jnp.float32)                # [TM, N] additive 0 / -1e30 (bf16 in HBM)
    ar_t = ar_ref[...]                                         # [TM, H] dest-side logits (this tile)
    al_t = alt_ref[...]                                        # [H, N]  source-side logits (all nodes)
    xp = xp_ref[...]                                           # [N, D]  bf16 values (all nodes)

    yacc_ref[...] = jnp.zeros_like(yacc_ref)                   # also zeroes the lane padding

    for h in range(heads):                                     # small static head loop (unrolled)
        s = ar_t[:, h:h + 1] + al_t[h:h + 1, :]                # [TM, N] broadcast add (VPU)
        s = jnp.where(s > 0, s, neg_slope * s)                 # LeakyReLU(0.2)
        s = s + mask_b                                         # mask non-edges (no selects)
        s = s - jnp.max(s, axis=-1, keepdims=True)             # row max finite via self-loop
        p = jnp.exp(s)                                         # masked entries underflow to 0
        inv_den = pl.reciprocal(jnp.sum(p, axis=-1, keepdims=True), approx=True)  # EUP slot
        o_h = jnp.dot(p.astype(jnp.bfloat16),
                      xp[:, h * head_dim:(h + 1) * head_dim],
                      preferred_element_type=jnp.float32)      # [TM, C] bf16 MXU, f32 acc
        yacc_ref[:, h * head_dim:(h + 1) * head_dim] = o_h * inv_den   # normalize after the MXU

    y = yacc_ref[...] + bias_ref[...]                          # [TM, D_pad]
    # dropout (p = 0 / eval) is identity; ELU(alpha=1); one lane-dense (128-multiple) store.
    out_ref[...] = jnp.where(y > 0, y, jnp.expm1(jnp.minimum(y, 0.0)))


def stand_gat_encoder(x, edge_index, params, *, heads, head_dim, neg_slope=0.2):
    """Forward pass of StandGATEncoder (conv1 -> dropout(identity) -> ELU)."""
    n, f_in = x.shape
    d = heads * head_dim
    w, att_l, att_r, bias = params

    # Fused weight: W_big = [ W | W@A_l | W@A_r ] without materializing block-diagonal A_*:
    #   w_al[f, h] = sum_c W[f, h*C+c] * att_l[h, c]
    w3 = w.reshape(f_in, heads, head_dim)
    w_al = jnp.einsum('fhc,hc->fh', w3, att_l)                 # [F_in, H]
    w_ar = jnp.einsum('fhc,hc->fh', w3, att_r)                 # [F_in, H]
    w_big = jnp.concatenate([w, w_al, w_ar], axis=-1)          # [F_in, D + 2H]

    # bf16 operands for the projection MXU call (f32 accumulate inside the kernel).
    x_bf = x.astype(jnp.bfloat16)
    w_big_bf = w_big.astype(jnp.bfloat16)

    # Additive mask: 0 on edges j->i and on the diagonal (self-loops), -1e30 elsewhere.
    # Stored in bf16: -1e30 is representable; halves the only O(N^2) HBM/VMEM traffic.
    src, dst = edge_index[0], edge_index[1]
    adj = jnp.zeros((n, n), jnp.float32).at[dst, src].set(1.0)
    adj = jnp.maximum(adj, jnp.eye(n, dtype=jnp.float32))
    mask_bias = jnp.where(adj > 0, 0.0, -1e30).astype(jnp.bfloat16)

    # Lane-dense output: pad D up to a multiple of 128 (unmasked vst), slice back afterwards.
    d_pad = ((d + 127) // 128) * 128
    bias_pad = jnp.zeros((1, d_pad), jnp.float32).at[:, :d].set(bias.reshape(1, d))

    cparams = pltpu.CompilerParams(
        dimension_semantics=("parallel",),          # megacore on v7x, no-op on v5e/v6e
        vmem_limit_bytes=32 * 1024 * 1024,          # explicit scoped VMEM (raise + sweep TM on v6e)
    )

    # ---- Pass 1: hoisted fused projection (runs once, not once per row tile). ----
    tm_p = n if n <= 256 else 256
    assert n % tm_p == 0, "demo wrapper assumes N is a multiple of the projection row tile"
    proj_kernel = functools.partial(gat_proj_kernel, d=d, heads=heads)
    xp_bf, al_t, ar = pl.pallas_call(
        proj_kernel,
        out_shape=(
            jax.ShapeDtypeStruct((n, d), jnp.bfloat16),        # xp (values, bf16)
            jax.ShapeDtypeStruct((heads, n), jnp.float32),     # al^T (source logits)
            jax.ShapeDtypeStruct((n, heads), jnp.float32),     # ar (dest logits)
        ),
        grid=(n // tm_p,),
        in_specs=[
            pl.BlockSpec((tm_p, f_in), lambda i: (i, 0)),
            pl.BlockSpec((f_in, d + 2 * heads), lambda i: (0, 0)),
        ],
        out_specs=(
            pl.BlockSpec((tm_p, d), lambda i: (i, 0)),
            pl.BlockSpec((heads, tm_p), lambda i: (0, i)),
            pl.BlockSpec((tm_p, heads), lambda i: (i, 0)),
        ),
        compiler_params=cparams,
    )(x_bf, w_big_bf)

    # ---- Pass 2: row-tiled attention. Pick TM so the parallel axis has >=2 steps (v7x). ----
    if n > 128:
        tm = 128
    elif n >= 16 and n % 16 == 0:
        tm = n // 2            # 2 grid steps -> both v7x TensorCores get work
    else:
        tm = n
    assert n % tm == 0, "demo wrapper assumes N is a multiple of the row tile"

    attn_kernel = functools.partial(gat_attn_kernel, heads=heads, head_dim=head_dim,
                                    neg_slope=neg_slope)
    out_pad = pl.pallas_call(
        attn_kernel,
        out_shape=jax.ShapeDtypeStruct((n, d_pad), jnp.float32),
        grid=(n // tm,),
        in_specs=[
            pl.BlockSpec((n, d), lambda i: (0, 0)),            # xp (grid-invariant, all nodes)
            pl.BlockSpec((heads, n), lambda i: (0, 0)),        # al^T (grid-invariant)
            pl.BlockSpec((tm, heads), lambda i: (i, 0)),       # ar row tile
            pl.BlockSpec((tm, n), lambda i: (i, 0)),           # bf16 additive mask row tile
            pl.BlockSpec((1, d_pad), lambda i: (0, 0)),        # padded bias (grid-invariant)
        ],
        out_specs=pl.BlockSpec((tm, d_pad), lambda i: (i, 0)),
        scratch_shapes=[pltpu.VMEM((tm, d_pad), jnp.float32)],  # per-tile head accumulator
        compiler_params=cparams,
    )(xp_bf, al_t, ar, mask_bias, bias_pad)

    return out_pad[:, :d]


def reference_forward(x, edge_index, params, *, heads, head_dim, neg_slope=0.2):
    """Pure-JAX f32 reference (same dense-mask formulation) for a sanity check."""
    n = x.shape[0]
    d = heads * head_dim
    w, att_l, att_r, bias = params
    src, dst = edge_index[0], edge_index[1]
    mask = jnp.zeros((n, n), jnp.float32).at[dst, src].set(1.0)
    mask = jnp.where(jnp.eye(n) > 0, 1.0, mask)

    xp = jnp.dot(x, w, precision=jax.lax.Precision.HIGHEST)            # [N, D]
    xph = xp.reshape(n, heads, head_dim)
    al = (xph * att_l[None]).sum(-1)                                    # [N, H]
    ar = (xph * att_r[None]).sum(-1)
    s = ar[:, None, :] + al[None, :, :]                                 # [N_i, N_j, H]
    s = jnp.where(s > 0, s, neg_slope * s)
    s = jnp.where(mask[:, :, None] > 0, s, -1e30)
    s = s - s.max(axis=1, keepdims=True)
    p = jnp.where(mask[:, :, None] > 0, jnp.exp(s), 0.0)
    attn = p / p.sum(axis=1, keepdims=True)
    out = jnp.einsum('ijh,jhc->ihc', attn, xph,
                     precision=jax.lax.Precision.HIGHEST).reshape(n, d)
    out = out + bias
    return jnp.where(out > 0, out, jnp.expm1(out))


if __name__ == "__main__":
    # StandGATEncoder(nfeat, nhid, nembed, dropout): num_head=8, head_dim_2 = nembed // 8
    # conv1 = GATConv(nfeat, head_dim_2, heads=8) -> output dim = nembed
    N = 16
    NFEAT = 16
    NEMBED = 32
    HEADS = 8
    HEAD_DIM = NEMBED // HEADS  # 4

    key = jax.random.PRNGKey(0)
    kx, kw, kal, kar = jax.random.split(key, 4)

    # Deterministic node features.
    x = jax.random.normal(kx, (N, NFEAT), dtype=jnp.float32)

    # Deterministic simple graph (no duplicate edges, no explicit self-loops).
    idx = jnp.arange(N)
    src = jnp.concatenate([idx, idx, (idx + 5) % N])
    dst = jnp.concatenate([(idx + 1) % N, (idx + 3) % N, idx])
    edge_index = jnp.stack([src, dst]).astype(jnp.int32)   # [2, 48]

    # Parameters (glorot-uniform like PyG's reset_parameters; bias = zeros).
    lim_w = math.sqrt(6.0 / (NFEAT + HEADS * HEAD_DIM))
    W = jax.random.uniform(kw, (NFEAT, HEADS * HEAD_DIM), jnp.float32, -lim_w, lim_w)
    lim_a = math.sqrt(6.0 / (HEADS + HEAD_DIM))
    att_l = jax.random.uniform(kal, (HEADS, HEAD_DIM), jnp.float32, -lim_a, lim_a)
    att_r = jax.random.uniform(kar, (HEADS, HEAD_DIM), jnp.float32, -lim_a, lim_a)
    bias = jnp.zeros((HEADS * HEAD_DIM,), jnp.float32)
    params = (W, att_l, att_r, bias)

    out = stand_gat_encoder(x, edge_index, params, heads=HEADS, head_dim=HEAD_DIM)
    out = jax.block_until_ready(out)

    ref = reference_forward(x, edge_index, params, heads=HEADS, head_dim=HEAD_DIM)
    assert out.shape == (N, NEMBED)
    # bf16 projection + bf16 attention operands + approx reciprocal vs. f32 HIGHEST reference
    # -> few-percent-level agreement.
    assert jnp.allclose(out, ref, atol=3e-2, rtol=3e-2), "kernel/reference mismatch"

    print("KERNEL_OK")
</pallas_src>

<mosaic_0001>
module attributes {stable_mosaic.version = 11 : i64} {
  func.func @gat_proj_kernel(%arg0: i32, %arg1: memref<16x16xbf16, #tpu.memory_space<vmem>>, %arg2: memref<16x48xbf16, #tpu.memory_space<vmem>>, %arg3: memref<16x32xbf16, #tpu.memory_space<vmem>>, %arg4: memref<8x16xf32, #tpu.memory_space<vmem>>, %arg5: memref<16x8xf32, #tpu.memory_space<vmem>>) attributes {dimension_semantics = [#tpu.dimension_semantics<parallel>], iteration_bounds = array<i64: 1>, scalar_prefetch = 0 : i64, scratch_operands = 0 : i64, tpu.core_type = #tpu.core_type<tc>, window_params = [{transform_indices = @transform_0, window_bounds = array<i64: 16, 16>}, {pipeline_mode = #tpu.pipeline_mode<synchronous>, transform_indices = @transform_1, window_bounds = array<i64: 16, 48>}, {transform_indices = @transform_2, window_bounds = array<i64: 16, 32>}, {transform_indices = @transform_3, window_bounds = array<i64: 8, 16>}, {transform_indices = @transform_4, window_bounds = array<i64: 16, 8>}]} {
    %c0 = arith.constant 0 : index
    %c0_0 = arith.constant 0 : index
    %0 = vector.load %arg1[%c0, %c0_0] : memref<16x16xbf16, #tpu.memory_space<vmem>>, vector<16x16xbf16>
    %c0_1 = arith.constant 0 : index
    %c0_2 = arith.constant 0 : index
    %1 = vector.load %arg2[%c0_1, %c0_2] : memref<16x48xbf16, #tpu.memory_space<vmem>>, vector<16x48xbf16>
    %cst = arith.constant dense<0.000000e+00> : vector<16x48xf32>
    %2 = tpu.matmul %0, %1, %cst {dimension_numbers = #tpu.dot_dimension_numbers<[1], [0], [0], [1], [0, 0, 1, 1], [], []>} : vector<16x16xbf16>, vector<16x48xbf16>, vector<16x48xf32> -> vector<16x48xf32>
    %3 = vector.extract_strided_slice %2 {offsets = [0, 0], sizes = [16, 32], strides = [1, 1]} : vector<16x48xf32> to vector<16x32xf32>
    %4 = arith.truncf %3 : vector<16x32xf32> to vector<16x32xbf16>
    %c0_3 = arith.constant 0 : index
    %c0_4 = arith.constant 0 : index
    %5 = vector.load %arg3[%c0_3, %c0_4] : memref<16x32xbf16, #tpu.memory_space<vmem>>, vector<16x32xbf16>
    tpu.vector_store %arg3[%c0_3, %c0_4], %4 {strides = array<i32>} : memref<16x32xbf16, #tpu.memory_space<vmem>>, vector<16x32xbf16>,
    %6 = vector.extract_strided_slice %2 {offsets = [0, 32], sizes = [16, 8], strides = [1, 1]} : vector<16x48xf32> to vector<16x8xf32>
    %7 = tpu.transpose %6, [1, 0] : vector<16x8xf32> -> vector<8x16xf32>
    %c0_5 = arith.constant 0 : index
    %c0_6 = arith.constant 0 : index
    %8 = vector.load %arg4[%c0_5, %c0_6] : memref<8x16xf32, #tpu.memory_space<vmem>>, vector<8x16xf32>
    tpu.vector_store %arg4[%c0_5, %c0_6], %7 {strides = array<i32>} : memref<8x16xf32, #tpu.memory_space<vmem>>, vector<8x16xf32>,
    %9 = vector.extract_strided_slice %2 {offsets = [0, 40], sizes = [16, 8], strides = [1, 1]} : vector<16x48xf32> to vector<16x8xf32>
    %c0_7 = arith.constant 0 : index
    %c0_8 = arith.constant 0 : index
    %10 = vector.load %arg5[%c0_7, %c0_8] : memref<16x8xf32, #tpu.memory_space<vmem>>, vector<16x8xf32>
    tpu.vector_store %arg5[%c0_7, %c0_8], %9 {strides = array<i32>} : memref<16x8xf32, #tpu.memory_space<vmem>>, vector<16x8xf32>,
    return
  }
  func.func @transform_0(%arg0: i32) -> (i32, i32) {
    %c0_i32 = arith.constant 0 : i32
    %c0_i32_0 = arith.constant 0 : i32
    return %arg0, %c0_i32 : i32, i32
  }
  func.func @transform_1(%arg0: i32) -> (i32, i32) {
    %c0_i32 = arith.constant 0 : i32
    %c0_i32_0 = arith.constant 0 : i32
    %c0_i32_1 = arith.constant 0 : i32
    return %c0_i32, %c0_i32_0 : i32, i32
  }
  func.func @transform_2(%arg0: i32) -> (i32, i32) {
    %c0_i32 = arith.constant 0 : i32
    %c0_i32_0 = arith.constant 0 : i32
    return %arg0, %c0_i32 : i32, i32
  }
  func.func @transform_3(%arg0: i32) -> (i32, i32) {
    %c0_i32 = arith.constant 0 : i32
    %c0_i32_0 = arith.constant 0 : i32
    return %c0_i32, %arg0 : i32, i32
  }
  func.func @transform_4(%arg0: i32) -> (i32, i32) {
    %c0_i32 = arith.constant 0 : i32
    %c0_i32_0 = arith.constant 0 : i32
    return %arg0, %c0_i32 : i32, i32
  }
}

</mosaic_0001>

<bundles_post_ra>
// kernel: tpu_custom_call.1
= control target key start
LH: loop header
LB: loop body
LE: loop exit
PB: predicated region body
PF: predicated region fallthrough
CT: control target
= control target key end

     0   :  { %10 = vsyncpa [#allocation3], 0  ;;  %s427_s0 = inlined_call_operand.hbm [shape: bf16[16,16], index: 0, kind: input, shape index: {}]   ;;  %s428_s1 = inlined_call_operand.hbm [shape: bf16[16,48], index: 1, kind: input, shape index: {}]   ;;  %s429_s2 = inlined_call_operand.hbm [shape: bf16[16,32], index: 2, kind: output, shape index: {0}]   ;;  %s430_s3 = inlined_call_operand.hbm [shape: f32[8,16], index: 3, kind: output, shape index: {1}]   ;;  %s431_s4 = inlined_call_operand.vmem [shape: f32[16,8], index: 4, kind: output, shape index: {2}]  }
   0x1   :  { %11 = vsyncpa [#allocation6], 0 }
   0x2   :  { %12 = vsyncpa [#allocation4], 0 }
   0x3   :  { %13 = vsyncpa [#allocation9], 0  ;;  %s325_s15 = smov [#allocation2]   ;;  %s229_s19 = scalar_lea.hbm %s427_s0, 128 }
   0x4   :  { %s19_s16 = sshll.u32 %s325_s15, 4  ;;  %p230_p0 = scmp.ne.s32.totalorder %s427_s0, %s229_s19  ;;  %s20_s16 = int_to_ptr.vmem [resolvable:$true] %s19_s16 }
   0x5   :  { %p233_p1 = scmp.lt.u32.totalorder %s229_s19, %s427_s0 }
   0x7   :  { %p235_p2 = pnand %p233_p1, %p230_p0 }
   0x9   :  { %238 = shalt.err (!%p235_p2)
}
   0xa   :  { %s239_s24 = scalar_lea.vmem %s20_s16, 128  ;;  %p244_p4 = scmp.lt.s32.totalorder %s20_s16, %s20_s16 }
   0xb   :  { %p240_p3 = scmp.ne.s32.totalorder %s20_s16, %s239_s24  ;;  %p245_p5 = scmp.lt.s32.totalorder %s239_s24, %s239_s24 }
   0xd   :  { %p246_p6 = por %p245_p5, %p244_p4 }
   0xf   :  { %p247_p7 = pnand %p246_p6, %p240_p3 }
  0x11   :  { %250 = shalt.err (!%p247_p7)
}
  0x12   :  { %s326_s25 = smov 64   ;;  %s327_s26 = smov 4  }
  0x13   :  { %25 = dma.hbm_to_vmem [thread:$0]  %s427_s0, 128, %s20_s16, [#allocation3], %s326_s25, %s326_s25, %s327_s26  }
  0x14   :  { %s328_s29 = smov [#allocation5]   ;;  %s251_s7 = scalar_lea.hbm %s428_s1, 128 }
  0x15   :  { %s31_s30 = sshll.u32 %s328_s29, 4  ;;  %p252_p8 = scmp.ne.s32.totalorder %s428_s1, %s251_s7  ;;  %s32_s30 = int_to_ptr.vmem [resolvable:$true] %s31_s30 }
  0x16   :  { %p255_p9 = scmp.lt.u32.totalorder %s251_s7, %s428_s1 }
  0x18   :  { %p257_p10 = pnand %p255_p9, %p252_p8 }
  0x1a   :  { %260 = shalt.err (!%p257_p10)
}
  0x1b   :  { %s261_s12 = scalar_lea.vmem %s32_s30, 128  ;;  %p266_p12 = scmp.lt.s32.totalorder %s32_s30, %s32_s30 }
  0x1c   :  { %p262_p11 = scmp.ne.s32.totalorder %s32_s30, %s261_s12  ;;  %p267_p13 = scmp.lt.s32.totalorder %s261_s12, %s261_s12 }
  0x1e   :  { %p268_p0 = por %p267_p13, %p266_p12 }
  0x20   :  { %p269_p1 = pnand %p268_p0, %p262_p11 }
  0x22   :  { %272 = shalt.err (!%p269_p1)
}
  0x23   :  { %37 = dma.hbm_to_vmem [thread:$0]  %s428_s1, 128, %s32_s30, [#allocation6], %s326_s25, %s326_s25, %s327_s26  }
  0x24   :  { %317 = dma.done.wait [#allocation3], 128  }
  0x25   :  { %318 = vsyncadd [#allocation3], 4294967168 }
  0x26   :  { %319 = dma.done.wait [#allocation6], 128  }
  0x27   :  { %320 = vsyncadd [#allocation6], 4294967168  ;;  %v329_v0 = vmov 0.0   ;;  %vm330_vm0 = vmmov 0   ;;  %v227_v1 = vld [vmem:[#allocation5] sm:$0xff]   ;;  %v228_v2 = vld [vmem:[#allocation2] sm:$0xff]  }
  0x28   :  { %211 = vmatprep.subr.bf16.mxu0 %v329_v0  ;;  %213 = vmatprep.mubr.msk.bf16.mxu0 %vm330_vm0, %v329_v0  ;;  %vm60_vm1 = vcmask 130048   ;;  %vm113_vm2 = vcmask 257024   ;;  %s331_s14 = smov 88   ;;  %s332_s1 = smov 96   ;;  %vm163_vm3 = vcmask 64512  }
  0x29   :  { %212 = vmatpush3.bf16.msra.mxu0 %v227_v1  ;;  %s333_s17 = smov [#allocation7]  }
  0x2a   :  { %s171_s18 = sshll.u32 %s333_s17, 4  ;;  %s172_s18 = int_to_ptr.vmem [resolvable:$true] %s171_s18 }
  0x2b   :  { %s273_s19 = scalar_lea.vmem %s172_s18, 128  ;;  %p278_p3 = scmp.lt.s32.totalorder %s172_s18, %s172_s18 }
  0x2c   :  { %214 = vmatmul.mubr.msk.bf16.vlgmr.msra.gmra.mrb[0].mxu0 %vm60_vm1, %v228_v2  ;;  %p274_p2 = scmp.ne.s32.totalorder %s172_s18, %s273_s19  ;;  %p279_p4 = scmp.lt.s32.totalorder %s273_s19, %s273_s19 }
  0x2e   :  { %p280_p5 = por %p279_p4, %p278_p3 }
  0x30   :  { %p281_p6 = pnand %p280_p5, %p274_p2 }
  0xff   :  { %v98_v3 = vpop.f32.mrb[0].mxu0 }
 0x100   :  { %v207_v4 = vpack.c.bf16 %v98_v3, %v98_v3  ;;  %157 = vrot.lane.b32.xlu1 %v98_v3, %s331_s14  ;;  %118 = vrot.lane.b32.xlu0 %v98_v3, %s332_s1  ;;  %v215_v5 = vpop.f32.mrb[1].mxu0 }
 0x101   :  { %v101_v6 = vpop.f32.mrb[2].mxu0 }
 0x102   :  { %v208_v7 = vpack.c.bf16 %v101_v6, %v101_v6  ;;  %v216_v8 = vpop.f32.mrb[3].mxu0  ;;  %114 = vst.msk [vmem:[#allocation7] sm:$0xf] %vm113_vm2, %v207_v4 }
 0x104   :  { %159 = vrot.lane.b32.xlu1 %v101_v6, %s331_s14  ;;  %120 = vrot.lane.b32.xlu0 %v101_v6, %s332_s1  ;;  %115 = vst.msk [vmem:[#allocation7 + $0x4] sm:$0xf] %vm113_vm2, %v208_v7 }
 0x172   :  { %v158_v9 = vpop.permute.xlu1 %157  ;;  %v119_v10 = vpop.permute.xlu0 %118 }
 0x173   :  { %164 = vst.msk [vmem:[%s431_s4] sm:$0xff] %vm163_vm3, %v158_v9  ;;  %124 = vxpose.xlu0.b32.start [1/2] (short) (narrow) %v119_v10, 8 }
 0x174   :  { %284 = shalt.err (!%p281_p6)
}
 0x175   :  { %s285_s22 = scalar_lea.hbm %s429_s2, 128 }
 0x176   :  { %p286_p7 = scmp.ne.s32.totalorder %s429_s2, %s285_s22  ;;  %p289_p8 = scmp.lt.u32.totalorder %s285_s22, %s429_s2 }
 0x178   :  { %p291_p9 = pnand %p289_p8, %p286_p7 }
 0x17a   :  { %294 = shalt.err (!%p291_p9)
}
 0x17b   :  { %177 = dma.vmem_to_hbm [thread:$0]  %s172_s18, 128, %s429_s2, [#allocation4], %s326_s25, %s326_s25, %s327_s26   ;;  %v160_v11 = vpop.permute.xlu1 %159  ;;  %v121_v12 = vpop.permute.xlu0 %120 }
 0x17c   :  { %165 = vst.msk [vmem:[%s431_s4 + $0x8] sm:$0xff] %vm163_vm3, %v160_v11  ;;  %125 = vxpose.xlu0.b32.end [2/2] (short) (narrow) %v121_v12, 8  ;;  %s334_s7 = smov [#allocation8]  }
 0x17d   :  { %s184_s8 = sshll.u32 %s334_s7, 4  ;;  %s185_s8 = int_to_ptr.vmem [resolvable:$true] %s184_s8 }
 0x17e   :  { %s295_s9 = scalar_lea.vmem %s185_s8, 128  ;;  %p300_p11 = scmp.lt.s32.totalorder %s185_s8, %s185_s8 }
 0x17f   :  { %p296_p10 = scmp.ne.s32.totalorder %s185_s8, %s295_s9  ;;  %p301_p12 = scmp.lt.s32.totalorder %s295_s9, %s295_s9 }
 0x181   :  { %p302_p13 = por %p301_p12, %p300_p11 }
 0x183   :  { %p303_p0 = pnand %p302_p13, %p296_p10 }
 0x1f8   :  { %v140_v13 = vpop.trf.xlu0 }
 0x1f9   :  { %156 = vst.msk [vmem:[#allocation8] sm:$0xff] %vm60_vm1, %v140_v13 }
 0x1fa   :  { %306 = shalt.err (!%p303_p0)
}
 0x1fb   :  { %s307_s26 = scalar_lea.hbm %s430_s3, 128 }
 0x1fc   :  { %p308_p1 = scmp.ne.s32.totalorder %s430_s3, %s307_s26  ;;  %p311_p2 = scmp.lt.u32.totalorder %s307_s26, %s430_s3 }
 0x1fe   :  { %p313_p3 = pnand %p311_p2, %p308_p1 }
 0x200   :  { %316 = shalt.err (!%p313_p3)
}
 0x201   :  { %187 = dma.vmem_to_hbm [thread:$0]  %s185_s8, 128, %s430_s3, [#allocation9]  }
 0x202   :  { %321 = dma.done.wait [#allocation4], 128  }
 0x203   :  { %322 = vsyncadd [#allocation4], 4294967168 }
 0x204   :  { %323 = dma.done.wait [#allocation9], 128  }
 0x205   :  { %324 = vsyncadd [#allocation9], 4294967168 }
 0x206   :  { %198 = vsyncpa [#allocation3], 1 }
 0x207   :  { %199 = vsyncpa [#allocation6], 1 }
 0x208   :  { %200 = vsyncpa [#allocation4], 1 }
 0x209   :  { %201 = vsyncpa [#allocation9], 1 }

</bundles_post_ra>
